<compile_context>
chip_gen: v6e
topology: v6e:2x2x1
jax: 0.10.0
libtpu: 0.0.40
codegen_flags: <defaults>
</compile_context>

<pallas_src>
import functools

import jax
import jax.numpy as jnp
from jax.experimental import pallas as pl
from jax.experimental.pallas import tpu as pltpu

LANE = 128
SUBLANE = 8
NODE_PAD = 16          # bf16 sublane tile


def _round_up(n, m):
    return ((n + m - 1) // m) * m


# ----------------------------------------------------------------------------
# Fused Pallas kernel
# ----------------------------------------------------------------------------
def _make_fused_kernel(num_gnns, bp, embp):
    """Builds the fused HINormer forward kernel (all dims are padded/static)."""

    def kernel(ego_ref,        # SMEM (bp,) int32            -- scalar prefetch
               x_ref,          # VMEM (Np, Kp)  f32          -- block-diag features + bias cols
               fcw_ref,        # VMEM (Kp, embp) f32         -- block-diag fc weights + bias rows
               a_ref,          # VMEM (Np, Np)  bf16         -- normalized adjacency
               gw_ref,         # VMEM (num_gnns*embp, embp) f32
               gb_ref,         # VMEM (num_gnns, embp) f32
               pw_ref,         # VMEM (embp, outp) f32
               pb_ref,         # VMEM (1, outp) f32
               out_ref,        # VMEM (bp, outp) f32
               gh_ref,         # VMEM scratch (Np, embp) f32, resident across layers
               h0_ref):        # VMEM scratch (bp, embp) f32, gathered ego rows
        # ---- 1) per-type fc: ONE block-diagonal MXU matmul (bias folded in) --
        gh_ref[...] = jnp.dot(x_ref[...], fcw_ref[...],
                              preferred_element_type=jnp.float32)

        # ---- 2) GCN layers, gh resident in VMEM: relu((A @ gh) @ W + b) ------
        a = a_ref[...]                                     # bf16, resident
        for layer in range(num_gnns):
            agg = jnp.dot(a, gh_ref[...].astype(jnp.bfloat16),
                          preferred_element_type=jnp.float32)
            w_l = gw_ref[pl.ds(layer * embp, embp), :]
            b_l = gb_ref[pl.ds(layer, 1), :]
            gh_ref[...] = jnp.maximum(
                jnp.dot(agg, w_l, preferred_element_type=jnp.float32) + b_l,
                0.0)

        # ---- 3) ego gather: O(batch) dynamic row reads, then prediction ------
        for b in range(bp):
            h0_ref[pl.ds(b, 1), :] = gh_ref[pl.ds(ego_ref[b], 1), :]
        out_ref[...] = (jnp.dot(h0_ref[...], pw_ref[...],
                                preferred_element_type=jnp.float32)
                        + pb_ref[...])

    return kernel


def hinormer_fused(ego, x_bd, fcw, a_hat, gw, gb, pw, pb, *, num_gnns):
    """One pallas_call for the full HINormer forward (padded shapes)."""
    n_p, k_p = x_bd.shape
    embp = fcw.shape[1]
    outp = pw.shape[1]
    bp = ego.shape[0]

    kernel = _make_fused_kernel(num_gnns, bp, embp)

    grid_spec = pltpu.PrefetchScalarGridSpec(
        num_scalar_prefetch=1,
        grid=(1,),
        in_specs=[
            pl.BlockSpec((n_p, k_p), lambda i, ego: (0, 0)),
            pl.BlockSpec((k_p, embp), lambda i, ego: (0, 0)),
            pl.BlockSpec((n_p, n_p), lambda i, ego: (0, 0)),
            pl.BlockSpec((num_gnns * embp, embp), lambda i, ego: (0, 0)),
            pl.BlockSpec((num_gnns, embp), lambda i, ego: (0, 0)),
            pl.BlockSpec((embp, outp), lambda i, ego: (0, 0)),
            pl.BlockSpec((1, outp), lambda i, ego: (0, 0)),
        ],
        out_specs=pl.BlockSpec((bp, outp), lambda i, ego: (0, 0)),
        scratch_shapes=[pltpu.VMEM((n_p, embp), jnp.float32),
                        pltpu.VMEM((bp, embp), jnp.float32)],
    )

    # vmem_limit sized to the actual resident set (x2 for input double
    # buffering) plus headroom; capped at 64 MiB so it is v7x-safe.
    input_bytes = sum(int(arr.size) * arr.dtype.itemsize
                      for arr in (x_bd, fcw, a_hat, gw, gb, pw, pb))
    out_bytes = bp * outp * 4
    scratch_bytes = (n_p * embp + bp * embp) * 4
    vmem_bytes = 2 * input_bytes + 2 * out_bytes + scratch_bytes + (4 << 20)
    vmem_limit = int(min(max(vmem_bytes, 32 << 20), 64 << 20))

    return pl.pallas_call(
        kernel,
        out_shape=jax.ShapeDtypeStruct((bp, outp), jnp.float32),
        grid_spec=grid_spec,
        compiler_params=pltpu.CompilerParams(
            dimension_semantics=("arbitrary",),
            vmem_limit_bytes=vmem_limit),
    )(ego, x_bd, fcw, a_hat, gw, gb, pw, pb)


# ----------------------------------------------------------------------------
# Graph pre-processing (glue, plain JAX) -- run ONCE per graph, outside jit
# ----------------------------------------------------------------------------
def build_gcn_adjacency(edge_index, num_nodes, n_pad):
    """Dense D^{-1/2}(A+I_remaining)D^{-1/2} with PyG gcn_norm semantics, bf16."""
    row, col = edge_index                       # row = src, col = dst
    # A[i, j] = number of edges j -> i
    A = jnp.zeros((num_nodes, num_nodes), jnp.float32).at[col, row].add(1.0)
    diag = jnp.diagonal(A)
    # add_remaining_self_loops: only add a self-loop where none exists.
    A = A + jnp.diag(jnp.where(diag > 0.0, 0.0, 1.0))
    deg = A.sum(axis=1)                         # in-degree incl. self loop
    dinv = jnp.where(deg > 0.0, jax.lax.rsqrt(deg), 0.0)
    a_hat = dinv[:, None] * A * dinv[None, :]
    a_hat = jnp.pad(a_hat, ((0, n_pad - num_nodes), (0, n_pad - num_nodes)))
    return a_hat.astype(jnp.bfloat16)


def build_blockdiag_features(x, node_type, num_types, n_pad, k_pad):
    """Features laid out block-diagonally over type column blocks + per-type
    bias-one columns, so the per-type fc becomes one matmul with fc_w_bd."""
    n, f = x.shape
    onehot = (node_type[:, None] ==
              jnp.arange(num_types, dtype=node_type.dtype)[None, :]).astype(x.dtype)
    blocks = jnp.einsum('nt,nf->ntf', onehot, x).reshape(n, num_types * f)
    x_bd = jnp.concatenate([blocks, onehot], axis=1)      # (N, T*f + T)
    return jnp.pad(x_bd, ((0, n_pad - n), (0, k_pad - x_bd.shape[1])))


# ----------------------------------------------------------------------------
# HINormer parameters (pre-padded to lane-dense shapes)
# ----------------------------------------------------------------------------
class HINormerParams:
    def __init__(self, key, num_types, in_dim, emb_dim, num_gnns, dim_out):
        self.num_types = num_types
        self.num_gnns = num_gnns
        self.in_dim = in_dim
        self.emb_dim = emb_dim
        self.dim_out = dim_out
        self.embp = _round_up(emb_dim, LANE)
        self.outp = _round_up(dim_out, LANE)
        # block-diagonal fc input width: num_types feature blocks + num_types
        # bias-one columns, padded lane-dense.
        self.k_raw = num_types * in_dim + num_types
        self.kp = _round_up(self.k_raw, LANE)

        ks = jax.random.split(key, 5)
        # fc_list: one Linear(in_dim, emb_dim) per node type
        fc_w = (jax.random.normal(ks[0], (num_types, in_dim, emb_dim), jnp.float32)
                / jnp.sqrt(in_dim))
        fc_b = jax.random.normal(ks[1], (num_types, emb_dim), jnp.float32) * 0.01
        # GCN layers
        gcn_w = (jax.random.normal(ks[2], (num_gnns, emb_dim, emb_dim), jnp.float32)
                 / jnp.sqrt(emb_dim))
        gcn_b = jnp.zeros((num_gnns, emb_dim), jnp.float32)
        # prediction head
        pred_w = (jax.random.normal(ks[3], (emb_dim, dim_out), jnp.float32)
                  / jnp.sqrt(emb_dim))
        pred_b = jax.random.normal(ks[4], (dim_out,), jnp.float32) * 0.01

        # Block-diagonal fc weight: rows [t*in_dim, (t+1)*in_dim) hold W_t and
        # row num_types*in_dim + t holds b_t; remaining rows/cols stay zero so
        # the lane padding never changes the logical output.
        w_bd = jnp.zeros((self.kp, self.embp), jnp.float32)
        for t in range(num_types):
            w_bd = w_bd.at[t * in_dim:(t + 1) * in_dim, :emb_dim].set(fc_w[t])
            w_bd = w_bd.at[num_types * in_dim + t, :emb_dim].set(fc_b[t])
        self.fc_w_bd = w_bd

        self.gcn_w_p = jnp.pad(
            gcn_w, ((0, 0), (0, self.embp - emb_dim), (0, self.embp - emb_dim))
        ).reshape(num_gnns * self.embp, self.embp)
        self.gcn_b_p = jnp.pad(gcn_b, ((0, 0), (0, self.embp - emb_dim)))
        self.pred_w_p = jnp.pad(
            pred_w, ((0, self.embp - emb_dim), (0, self.outp - dim_out)))
        self.pred_b_p = jnp.pad(pred_b, (0, self.outp - dim_out)).reshape(1, self.outp)


# ----------------------------------------------------------------------------
# Forward
# ----------------------------------------------------------------------------
def hinormer_forward(params, a_hat, x, label, seqs, node_type, norm=False):
    n_pad = a_hat.shape[0]
    ego = seqs[:, 0].astype(jnp.int32)
    batch = ego.shape[0]
    bp = max(SUBLANE, _round_up(batch, SUBLANE))
    ego_p = jnp.pad(ego, (0, bp - batch))   # padded ego rows point at node 0, sliced off below

    x_bd = build_blockdiag_features(x, node_type, params.num_types, n_pad, params.kp)

    out_p = hinormer_fused(
        ego_p, x_bd, params.fc_w_bd, a_hat,
        params.gcn_w_p, params.gcn_b_p, params.pred_w_p, params.pred_b_p,
        num_gnns=params.num_gnns)

    output = out_p[:batch, :params.dim_out]
    if norm:
        output = output / (jnp.linalg.norm(output, axis=1, keepdims=True) + 1e-12)
    return output, jnp.take(label, ego, axis=0)


# ----------------------------------------------------------------------------
# Demo
# ----------------------------------------------------------------------------
if __name__ == "__main__":
    key = jax.random.PRNGKey(0)
    k_x, k_e, k_lab, k_seq, k_par = jax.random.split(key, 5)

    # small synthetic heterogeneous graph
    NUM_TYPES = 3
    NODES_PER_TYPE = 8
    N = NUM_TYPES * NODES_PER_TYPE            # 24 nodes
    F_IN = 16                                 # raw feature dim (all types)
    EMB = 32                                  # cfg.gnn.dim_inner
    NUM_GNNS = 2                              # cfg.gnn.layers_mp
    DIM_OUT = 8                               # number of classes
    B, L = 8, 6                               # seqs: [batch, seq_len]

    # node types as produced by PyG to_homogeneous (grouping not required by
    # the block-diagonal fc, but kept for fidelity)
    node_type = jnp.repeat(jnp.arange(NUM_TYPES, dtype=jnp.int32), NODES_PER_TYPE)

    x = jax.random.normal(k_x, (N, F_IN), jnp.float32)

    # undirected ring + a few random symmetric edges
    ring_src = jnp.arange(N, dtype=jnp.int32)
    ring_dst = (ring_src + 1) % N
    rnd = jax.random.randint(k_e, (2, 8), 0, N, dtype=jnp.int32)
    src = jnp.concatenate([ring_src, ring_dst, rnd[0], rnd[1]])
    dst = jnp.concatenate([ring_dst, ring_src, rnd[1], rnd[0]])
    edge_index = jnp.stack([src, dst])        # [2, E]

    label = jax.random.randint(k_lab, (N,), 0, DIM_OUT, dtype=jnp.int32)
    seqs = jax.random.randint(k_seq, (B, L), 0, N, dtype=jnp.int32)

    params = HINormerParams(k_par, NUM_TYPES, F_IN, EMB, NUM_GNNS, DIM_OUT)

    # a_hat built ONCE per graph, outside the jitted forward (bf16, padded).
    N_PAD = _round_up(N, NODE_PAD)
    a_hat = jax.block_until_ready(build_gcn_adjacency(edge_index, N, N_PAD))

    fwd = jax.jit(functools.partial(hinormer_forward, params, a_hat, norm=False))
    output, ego_labels = fwd(x, label, seqs, node_type)
    jax.block_until_ready((output, ego_labels))

    assert output.shape == (B, DIM_OUT) and output.dtype == jnp.float32
    assert ego_labels.shape == (B,)
    assert bool(jnp.all(jnp.isfinite(output)))
    print("KERNEL_OK")
</pallas_src>

<mosaic_0001>
module attributes {stable_mosaic.version = 11 : i64} {
  func.func @kernel(%arg0: i32, %arg1: memref<8xi32, #tpu.memory_space<smem>>, %arg2: memref<32x128xf32, #tpu.memory_space<vmem>>, %arg3: memref<128x128xf32, #tpu.memory_space<vmem>>, %arg4: memref<32x32xbf16, #tpu.memory_space<vmem>>, %arg5: memref<256x128xf32, #tpu.memory_space<vmem>>, %arg6: memref<2x128xf32, #tpu.memory_space<vmem>>, %arg7: memref<128x128xf32, #tpu.memory_space<vmem>>, %arg8: memref<1x128xf32, #tpu.memory_space<vmem>>, %arg9: memref<8x128xf32, #tpu.memory_space<vmem>>, %arg10: memref<32x128xf32, #tpu.memory_space<vmem>>, %arg11: memref<8x128xf32, #tpu.memory_space<vmem>>) attributes {dimension_semantics = [#tpu.dimension_semantics<arbitrary>], iteration_bounds = array<i64: 1>, scalar_prefetch = 1 : i64, scratch_operands = 2 : i64, tpu.core_type = #tpu.core_type<tc>, window_params = [{pipeline_mode = #tpu.pipeline_mode<synchronous>, transform_indices = @transform_0, window_bounds = array<i64: 32, 128>}, {pipeline_mode = #tpu.pipeline_mode<synchronous>, transform_indices = @transform_1, window_bounds = array<i64: 128, 128>}, {pipeline_mode = #tpu.pipeline_mode<synchronous>, transform_indices = @transform_2, window_bounds = array<i64: 32, 32>}, {pipeline_mode = #tpu.pipeline_mode<synchronous>, transform_indices = @transform_3, window_bounds = array<i64: 256, 128>}, {pipeline_mode = #tpu.pipeline_mode<synchronous>, transform_indices = @transform_4, window_bounds = array<i64: 2, 128>}, {pipeline_mode = #tpu.pipeline_mode<synchronous>, transform_indices = @transform_5, window_bounds = array<i64: 128, 128>}, {pipeline_mode = #tpu.pipeline_mode<synchronous>, transform_indices = @transform_6, window_bounds = array<i64: 1, 128>}, {pipeline_mode = #tpu.pipeline_mode<synchronous>, transform_indices = @transform_7, window_bounds = array<i64: 8, 128>}]} {
    %c0 = arith.constant 0 : index
    %c0_0 = arith.constant 0 : index
    %0 = vector.load %arg2[%c0, %c0_0] : memref<32x128xf32, #tpu.memory_space<vmem>>, vector<32x128xf32>
    %c0_1 = arith.constant 0 : index
    %c0_2 = arith.constant 0 : index
    %1 = vector.load %arg3[%c0_1, %c0_2] : memref<128x128xf32, #tpu.memory_space<vmem>>, vector<128x128xf32>
    %cst = arith.constant dense<0.000000e+00> : vector<32x128xf32>
    %2 = tpu.matmul %0, %1, %cst {dimension_numbers = #tpu.dot_dimension_numbers<[1], [0], [0], [1], [0, 0, 1, 1], [], []>} : vector<32x128xf32>, vector<128x128xf32>, vector<32x128xf32> -> vector<32x128xf32>
    %c0_3 = arith.constant 0 : index
    %c0_4 = arith.constant 0 : index
    %3 = vector.load %arg10[%c0_3, %c0_4] : memref<32x128xf32, #tpu.memory_space<vmem>>, vector<32x128xf32>
    tpu.vector_store %arg10[%c0_3, %c0_4], %2 {strides = array<i32>} : memref<32x128xf32, #tpu.memory_space<vmem>>, vector<32x128xf32>,
    %c0_5 = arith.constant 0 : index
    %c0_6 = arith.constant 0 : index
    %4 = vector.load %arg4[%c0_5, %c0_6] : memref<32x32xbf16, #tpu.memory_space<vmem>>, vector<32x32xbf16>
    %c0_7 = arith.constant 0 : index
    %c0_8 = arith.constant 0 : index
    %5 = vector.load %arg10[%c0_7, %c0_8] : memref<32x128xf32, #tpu.memory_space<vmem>>, vector<32x128xf32>
    %6 = arith.truncf %5 : vector<32x128xf32> to vector<32x128xbf16>
    %cst_9 = arith.constant dense<0.000000e+00> : vector<32x128xf32>
    %7 = tpu.matmul %4, %6, %cst_9 {dimension_numbers = #tpu.dot_dimension_numbers<[1], [0], [0], [1], [0, 0, 1, 1], [], []>} : vector<32x32xbf16>, vector<32x128xbf16>, vector<32x128xf32> -> vector<32x128xf32>
    %c0_10 = arith.constant 0 : index
    %c0_11 = arith.constant 0 : index
    %8 = vector.load %arg5[%c0_10, %c0_11] : memref<256x128xf32, #tpu.memory_space<vmem>>, vector<128x128xf32>
    %c0_12 = arith.constant 0 : index
    %c0_13 = arith.constant 0 : index
    %9 = vector.load %arg6[%c0_12, %c0_13] : memref<2x128xf32, #tpu.memory_space<vmem>>, vector<1x128xf32>
    %cst_14 = arith.constant dense<0.000000e+00> : vector<32x128xf32>
    %10 = tpu.matmul %7, %8, %cst_14 {dimension_numbers = #tpu.dot_dimension_numbers<[1], [0], [0], [1], [0, 0, 1, 1], [], []>} : vector<32x128xf32>, vector<128x128xf32>, vector<32x128xf32> -> vector<32x128xf32>
    %11 = vector.broadcast %9 : vector<1x128xf32> to vector<32x128xf32>
    %12 = arith.addf %10, %11 : vector<32x128xf32>
    %cst_15 = arith.constant 0.000000e+00 : f32
    %13 = vector.broadcast %cst_15 : f32 to vector<32x128xf32>
    %14 = arith.maximumf %12, %13 : vector<32x128xf32>
    %c0_16 = arith.constant 0 : index
    %c0_17 = arith.constant 0 : index
    %15 = vector.load %arg10[%c0_16, %c0_17] : memref<32x128xf32, #tpu.memory_space<vmem>>, vector<32x128xf32>
    tpu.vector_store %arg10[%c0_16, %c0_17], %14 {strides = array<i32>} : memref<32x128xf32, #tpu.memory_space<vmem>>, vector<32x128xf32>,
    %c0_18 = arith.constant 0 : index
    %c0_19 = arith.constant 0 : index
    %16 = vector.load %arg10[%c0_18, %c0_19] : memref<32x128xf32, #tpu.memory_space<vmem>>, vector<32x128xf32>
    %17 = arith.truncf %16 : vector<32x128xf32> to vector<32x128xbf16>
    %cst_20 = arith.constant dense<0.000000e+00> : vector<32x128xf32>
    %18 = tpu.matmul %4, %17, %cst_20 {dimension_numbers = #tpu.dot_dimension_numbers<[1], [0], [0], [1], [0, 0, 1, 1], [], []>} : vector<32x32xbf16>, vector<32x128xbf16>, vector<32x128xf32> -> vector<32x128xf32>
    %c128 = arith.constant 128 : index
    %c0_21 = arith.constant 0 : index
    %19 = vector.load %arg5[%c128, %c0_21] : memref<256x128xf32, #tpu.memory_space<vmem>>, vector<128x128xf32>
    %c1 = arith.constant 1 : index
    %c0_22 = arith.constant 0 : index
    %20 = vector.load %arg6[%c1, %c0_22] : memref<2x128xf32, #tpu.memory_space<vmem>>, vector<1x128xf32>
    %cst_23 = arith.constant dense<0.000000e+00> : vector<32x128xf32>
    %21 = tpu.matmul %18, %19, %cst_23 {dimension_numbers = #tpu.dot_dimension_numbers<[1], [0], [0], [1], [0, 0, 1, 1], [], []>} : vector<32x128xf32>, vector<128x128xf32>, vector<32x128xf32> -> vector<32x128xf32>
    %22 = vector.broadcast %20 : vector<1x128xf32> to vector<32x128xf32>
    %23 = arith.addf %21, %22 : vector<32x128xf32>
    %cst_24 = arith.constant 0.000000e+00 : f32
    %24 = vector.broadcast %cst_24 : f32 to vector<32x128xf32>
    %25 = arith.maximumf %23, %24 : vector<32x128xf32>
    %c0_25 = arith.constant 0 : index
    %c0_26 = arith.constant 0 : index
    %26 = vector.load %arg10[%c0_25, %c0_26] : memref<32x128xf32, #tpu.memory_space<vmem>>, vector<32x128xf32>
    tpu.vector_store %arg10[%c0_25, %c0_26], %25 {strides = array<i32>} : memref<32x128xf32, #tpu.memory_space<vmem>>, vector<32x128xf32>,
    %c0_27 = arith.constant 0 : index
    %27 = memref.load %arg1[%c0_27] : memref<8xi32, #tpu.memory_space<smem>>
    %28 = arith.index_cast %27 : i32 to index
    %c0_28 = arith.constant 0 : index
    %29 = vector.load %arg10[%28, %c0_28] : memref<32x128xf32, #tpu.memory_space<vmem>>, vector<1x128xf32>
    %c0_29 = arith.constant 0 : index
    %c0_30 = arith.constant 0 : index
    %30 = vector.load %arg11[%c0_29, %c0_30] : memref<8x128xf32, #tpu.memory_space<vmem>>, vector<1x128xf32>
    tpu.vector_store %arg11[%c0_29, %c0_30], %29 {strides = array<i32>} : memref<8x128xf32, #tpu.memory_space<vmem>>, vector<1x128xf32>,
    %c1_31 = arith.constant 1 : index
    %31 = memref.load %arg1[%c1_31] : memref<8xi32, #tpu.memory_space<smem>>
    %32 = arith.index_cast %31 : i32 to index
    %c0_32 = arith.constant 0 : index
    %33 = vector.load %arg10[%32, %c0_32] : memref<32x128xf32, #tpu.memory_space<vmem>>, vector<1x128xf32>
    %c1_33 = arith.constant 1 : index
    %c0_34 = arith.constant 0 : index
    %34 = vector.load %arg11[%c1_33, %c0_34] : memref<8x128xf32, #tpu.memory_space<vmem>>, vector<1x128xf32>
    tpu.vector_store %arg11[%c1_33, %c0_34], %33 {strides = array<i32>} : memref<8x128xf32, #tpu.memory_space<vmem>>, vector<1x128xf32>,
    %c2 = arith.constant 2 : index
    %35 = memref.load %arg1[%c2] : memref<8xi32, #tpu.memory_space<smem>>
    %36 = arith.index_cast %35 : i32 to index
    %c0_35 = arith.constant 0 : index
    %37 = vector.load %arg10[%36, %c0_35] : memref<32x128xf32, #tpu.memory_space<vmem>>, vector<1x128xf32>
    %c2_36 = arith.constant 2 : index
    %c0_37 = arith.constant 0 : index
    %38 = vector.load %arg11[%c2_36, %c0_37] : memref<8x128xf32, #tpu.memory_space<vmem>>, vector<1x128xf32>
    tpu.vector_store %arg11[%c2_36, %c0_37], %37 {strides = array<i32>} : memref<8x128xf32, #tpu.memory_space<vmem>>, vector<1x128xf32>,
    %c3 = arith.constant 3 : index
    %39 = memref.load %arg1[%c3] : memref<8xi32, #tpu.memory_space<smem>>
    %40 = arith.index_cast %39 : i32 to index
    %c0_38 = arith.constant 0 : index
    %41 = vector.load %arg10[%40, %c0_38] : memref<32x128xf32, #tpu.memory_space<vmem>>, vector<1x128xf32>
    %c3_39 = arith.constant 3 : index
    %c0_40 = arith.constant 0 : index
    %42 = vector.load %arg11[%c3_39, %c0_40] : memref<8x128xf32, #tpu.memory_space<vmem>>, vector<1x128xf32>
    tpu.vector_store %arg11[%c3_39, %c0_40], %41 {strides = array<i32>} : memref<8x128xf32, #tpu.memory_space<vmem>>, vector<1x128xf32>,
    %c4 = arith.constant 4 : index
    %43 = memref.load %arg1[%c4] : memref<8xi32, #tpu.memory_space<smem>>
    %44 = arith.index_cast %43 : i32 to index
    %c0_41 = arith.constant 0 : index
    %45 = vector.load %arg10[%44, %c0_41] : memref<32x128xf32, #tpu.memory_space<vmem>>, vector<1x128xf32>
    %c4_42 = arith.constant 4 : index
    %c0_43 = arith.constant 0 : index
    %46 = vector.load %arg11[%c4_42, %c0_43] : memref<8x128xf32, #tpu.memory_space<vmem>>, vector<1x128xf32>
    tpu.vector_store %arg11[%c4_42, %c0_43], %45 {strides = array<i32>} : memref<8x128xf32, #tpu.memory_space<vmem>>, vector<1x128xf32>,
    %c5 = arith.constant 5 : index
    %47 = memref.load %arg1[%c5] : memref<8xi32, #tpu.memory_space<smem>>
    %48 = arith.index_cast %47 : i32 to index
    %c0_44 = arith.constant 0 : index
    %49 = vector.load %arg10[%48, %c0_44] : memref<32x128xf32, #tpu.memory_space<vmem>>, vector<1x128xf32>
    %c5_45 = arith.constant 5 : index
    %c0_46 = arith.constant 0 : index
    %50 = vector.load %arg11[%c5_45, %c0_46] : memref<8x128xf32, #tpu.memory_space<vmem>>, vector<1x128xf32>
    tpu.vector_store %arg11[%c5_45, %c0_46], %49 {strides = array<i32>} : memref<8x128xf32, #tpu.memory_space<vmem>>, vector<1x128xf32>,
    %c6 = arith.constant 6 : index
    %51 = memref.load %arg1[%c6] : memref<8xi32, #tpu.memory_space<smem>>
    %52 = arith.index_cast %51 : i32 to index
    %c0_47 = arith.constant 0 : index
    %53 = vector.load %arg10[%52, %c0_47] : memref<32x128xf32, #tpu.memory_space<vmem>>, vector<1x128xf32>
    %c6_48 = arith.constant 6 : index
    %c0_49 = arith.constant 0 : index
    %54 = vector.load %arg11[%c6_48, %c0_49] : memref<8x128xf32, #tpu.memory_space<vmem>>, vector<1x128xf32>
    tpu.vector_store %arg11[%c6_48, %c0_49], %53 {strides = array<i32>} : memref<8x128xf32, #tpu.memory_space<vmem>>, vector<1x128xf32>,
    %c7 = arith.constant 7 : index
    %55 = memref.load %arg1[%c7] : memref<8xi32, #tpu.memory_space<smem>>
    %56 = arith.index_cast %55 : i32 to index
    %c0_50 = arith.constant 0 : index
    %57 = vector.load %arg10[%56, %c0_50] : memref<32x128xf32, #tpu.memory_space<vmem>>, vector<1x128xf32>
    %c7_51 = arith.constant 7 : index
    %c0_52 = arith.constant 0 : index
    %58 = vector.load %arg11[%c7_51, %c0_52] : memref<8x128xf32, #tpu.memory_space<vmem>>, vector<1x128xf32>
    tpu.vector_store %arg11[%c7_51, %c0_52], %57 {strides = array<i32>} : memref<8x128xf32, #tpu.memory_space<vmem>>, vector<1x128xf32>,
    %c0_53 = arith.constant 0 : index
    %c0_54 = arith.constant 0 : index
    %59 = vector.load %arg11[%c0_53, %c0_54] : memref<8x128xf32, #tpu.memory_space<vmem>>, vector<8x128xf32>
    %c0_55 = arith.constant 0 : index
    %c0_56 = arith.constant 0 : index
    %60 = vector.load %arg7[%c0_55, %c0_56] : memref<128x128xf32, #tpu.memory_space<vmem>>, vector<128x128xf32>
    %cst_57 = arith.constant dense<0.000000e+00> : vector<8x128xf32>
    %61 = tpu.matmul %59, %60, %cst_57 {dimension_numbers = #tpu.dot_dimension_numbers<[1], [0], [0], [1], [0, 0, 1, 1], [], []>} : vector<8x128xf32>, vector<128x128xf32>, vector<8x128xf32> -> vector<8x128xf32>
    %c0_58 = arith.constant 0 : index
    %c0_59 = arith.constant 0 : index
    %62 = vector.load %arg8[%c0_58, %c0_59] : memref<1x128xf32, #tpu.memory_space<vmem>>, vector<1x128xf32>
    %63 = vector.broadcast %62 : vector<1x128xf32> to vector<8x128xf32>
    %64 = arith.addf %61, %63 : vector<8x128xf32>
    %c0_60 = arith.constant 0 : index
    %c0_61 = arith.constant 0 : index
    %65 = vector.load %arg9[%c0_60, %c0_61] : memref<8x128xf32, #tpu.memory_space<vmem>>, vector<8x128xf32>
    tpu.vector_store %arg9[%c0_60, %c0_61], %64 {strides = array<i32>} : memref<8x128xf32, #tpu.memory_space<vmem>>, vector<8x128xf32>,
    return
  }
  func.func @transform_0(%arg0: i32, %arg1: memref<8xi32, #tpu.memory_space<smem>>) -> (i32, i32) {
    %c0_i32 = arith.constant 0 : i32
    %c0_i32_0 = arith.constant 0 : i32
    %c0_i32_1 = arith.constant 0 : i32
    return %c0_i32, %c0_i32_0 : i32, i32
  }
  func.func @transform_1(%arg0: i32, %arg1: memref<8xi32, #tpu.memory_space<smem>>) -> (i32, i32) {
    %c0_i32 = arith.constant 0 : i32
    %c0_i32_0 = arith.constant 0 : i32
    %c0_i32_1 = arith.constant 0 : i32
    return %c0_i32, %c0_i32_0 : i32, i32
  }
  func.func @transform_2(%arg0: i32, %arg1: memref<8xi32, #tpu.memory_space<smem>>) -> (i32, i32) {
    %c0_i32 = arith.constant 0 : i32
    %c0_i32_0 = arith.constant 0 : i32
    %c0_i32_1 = arith.constant 0 : i32
    return %c0_i32, %c0_i32_0 : i32, i32
  }
  func.func @transform_3(%arg0: i32, %arg1: memref<8xi32, #tpu.memory_space<smem>>) -> (i32, i32) {
    %c0_i32 = arith.constant 0 : i32
    %c0_i32_0 = arith.constant 0 : i32
    %c0_i32_1 = arith.constant 0 : i32
    return %c0_i32, %c0_i32_0 : i32, i32
  }
  func.func @transform_4(%arg0: i32, %arg1: memref<8xi32, #tpu.memory_space<smem>>) -> (i32, i32) {
    %c0_i32 = arith.constant 0 : i32
    %c0_i32_0 = arith.constant 0 : i32
    %c0_i32_1 = arith.constant 0 : i32
    return %c0_i32, %c0_i32_0 : i32, i32
  }
  func.func @transform_5(%arg0: i32, %arg1: memref<8xi32, #tpu.memory_space<smem>>) -> (i32, i32) {
    %c0_i32 = arith.constant 0 : i32
    %c0_i32_0 = arith.constant 0 : i32
    %c0_i32_1 = arith.constant 0 : i32
    return %c0_i32, %c0_i32_0 : i32, i32
  }
  func.func @transform_6(%arg0: i32, %arg1: memref<8xi32, #tpu.memory_space<smem>>) -> (i32, i32) {
    %c0_i32 = arith.constant 0 : i32
    %c0_i32_0 = arith.constant 0 : i32
    %c0_i32_1 = arith.constant 0 : i32
    return %c0_i32, %c0_i32_0 : i32, i32
  }
  func.func @transform_7(%arg0: i32, %arg1: memref<8xi32, #tpu.memory_space<smem>>) -> (i32, i32) {
    %c0_i32 = arith.constant 0 : i32
    %c0_i32_0 = arith.constant 0 : i32
    %c0_i32_1 = arith.constant 0 : i32
    return %c0_i32, %c0_i32_0 : i32, i32
  }
}

</mosaic_0001>

<bundles_post_ra>
// kernel: hinormer_forward.1
= control target key start
LH: loop header
LB: loop body
LE: loop exit
PB: predicated region body
PF: predicated region fallthrough
CT: control target
= control target key end

     0   :  { %s1234_s0 = inlined_call_operand.vmem [shape: s32[8], index: 0, kind: input, shape index: {}]   ;;  %s1235_s1 = inlined_call_operand.vmem [shape: f32[32,128], index: 1, kind: input, shape index: {}]   ;;  %s1236_s2 = inlined_call_operand.hbm [shape: f32[128,128], index: 2, kind: input, shape index: {}]   ;;  %s1237_s3 = inlined_call_operand.vmem [shape: bf16[32,32], index: 3, kind: input, shape index: {}]   ;;  %s1238_s4 = inlined_call_operand.vmem [shape: f32[256,128], index: 4, kind: input, shape index: {}]   ;;  %s1239_s5 = inlined_call_operand.vmem [shape: f32[2,128], index: 5, kind: input, shape index: {}]   ;;  %s1240_s6 = inlined_call_operand.hbm [shape: f32[128,128], index: 6, kind: input, shape index: {}]   ;;  %s1241_s7 = inlined_call_operand.vmem [shape: f32[1,128], index: 7, kind: input, shape index: {}]   ;;  %s1242_s8 = inlined_call_operand.hbm [shape: f32[8,128], index: 8, kind: output, shape index: {}]  }
   0x1   :  { %s13_s29 = sshll.u32 %s1234_s0, 4  ;;  %s14_s29 = int_to_ptr.vmem [resolvable:$true] %s13_s29 }
   0x2   :  { %s958_s30 = scalar_lea.vmem %s14_s29, 16  ;;  %p963_p1 = scmp.lt.s32.totalorder %s14_s29, %s14_s29 }
   0x3   :  { %p959_p0 = scmp.ne.s32.totalorder %s14_s29, %s958_s30  ;;  %p964_p2 = scmp.lt.s32.totalorder %s958_s30, %s958_s30 }
   0x5   :  { %p965_p3 = por %p964_p2, %p963_p1 }
   0x7   :  { %p966_p4 = pnand %p965_p3, %p959_p0 }
   0x9   :  { %969 = shalt.err (!%p966_p4)  }
   0xa   :  { %s1038_s9 = smov [#allocation5]  }
   0xb   :  { %16 = dma.vmem_to_smem %s14_s29, 16, %s1038_s9, [#allocation4] }
   0xc   :  { %1030 = dma.done.wait [#allocation4], 16 }
   0xd   :  { %1031 = vsyncadd [#allocation4], 4294967280 }
   0xe   :  { %18 = sfence }
   0xf   :  { %19 = vsyncpa [#allocation7], 0 }
  0x10   :  { %20 = vsyncpa [#allocation10], 0 }
  0x11   :  { %21 = vsyncpa [#allocation8], 0  ;;  %s1039_s10 = smov [#allocation6]  }
  0x12   :  { %s29_s11 = sshll.u32 %s1039_s10, 4  ;;  %s30_s11 = int_to_ptr.vmem [resolvable:$true] %s29_s11 }
  0x13   :  { %s978_s0 = scalar_lea.vmem %s30_s11, 2048  ;;  %p983_p6 = scmp.lt.s32.totalorder %s30_s11, %s30_s11 }
  0x14   :  { %p979_p5 = scmp.ne.s32.totalorder %s30_s11, %s978_s0  ;;  %p984_p7 = scmp.lt.s32.totalorder %s978_s0, %s978_s0 }
  0x16   :  { %p985_p8 = por %p984_p7, %p983_p6 }
  0x18   :  { %p986_p9 = pnand %p985_p8, %p979_p5 }
  0x1a   :  { %989 = shalt.err (!%p986_p9)
}
  0x1b   :  { %s1040_s12 = smov 128   ;;  %s1041_s13 = smov 8  }
  0x1c   :  { %35 = dma.hbm_to_vmem [thread:$0]  %s1236_s2, 2048, %s30_s11, [#allocation7], %s1040_s12, %s1040_s12, %s1041_s13  }
  0x1d   :  { %s1042_s16 = smov [#allocation9]  }
  0x1e   :  { %s47_s17 = sshll.u32 %s1042_s16, 4  ;;  %s48_s17 = int_to_ptr.vmem [resolvable:$true] %s47_s17 }
  0x1f   :  { %s998_s18 = scalar_lea.vmem %s48_s17, 2048  ;;  %p1003_p11 = scmp.lt.s32.totalorder %s48_s17, %s48_s17 }
  0x20   :  { %p999_p10 = scmp.ne.s32.totalorder %s48_s17, %s998_s18  ;;  %p1004_p12 = scmp.lt.s32.totalorder %s998_s18, %s998_s18 }
  0x22   :  { %p1005_p13 = por %p1004_p12, %p1003_p11 }
  0x24   :  { %p1006_p0 = pnand %p1005_p13, %p999_p10 }
  0x26   :  { %1009 = shalt.err (!%p1006_p0)
}
  0x27   :  { %53 = dma.hbm_to_vmem [thread:$0]  %s1240_s6, 2048, %s48_s17, [#allocation10], %s1040_s12, %s1040_s12, %s1041_s13  }
  0x28   :  { %1032 = dma.done.wait [#allocation7], 2048  }
  0x29   :  { %1033 = vsyncadd [#allocation7], 4294965248 }
  0x2a   :  { %1034 = dma.done.wait [#allocation10], 2048  }
  0x2b   :  { %1035 = vsyncadd [#allocation10], 4294965248  ;;  %v82_v0 = vld [vmem:[#allocation6 + $0x78] sm:$0xff]  ;;  %v81_v1 = vld [vmem:[#allocation6 + $0x70] sm:$0xff]  ;;  %vm192_vm0 = vcmask 261120   ;;  %vm1044_vm1 = vmmov 0  }
  0x2c   :  { %783 = vmatprep.subr.mxu0 %v82_v0  ;;  %v80_v2 = vld [vmem:[#allocation6 + $0x68] sm:$0xff]  ;;  %v79_v3 = vld [vmem:[#allocation6 + $0x60] sm:$0xff]  ;;  %v63_v4 = vld [vmem:[%s1235_s1] sm:$0xff]  ;;  %s531_s19 = sld [smem:[#allocation5]]  ;;  %s1045_s11 = smov [#allocation11]  }
  0x2d   :  { %784 = vmatpush3.msra.mxu0 %v82_v0  ;;  %v78_v5 = vld [vmem:[#allocation6 + $0x58] sm:$0xff]  ;;  %815 = vmatprep.mubr.f32.mxu0 %v63_v4  ;;  %v77_v6 = vld [vmem:[#allocation6 + $0x50] sm:$0xff]  ;;  %v76_v7 = vld [vmem:[#allocation6 + $0x48] sm:$0xff]  ;;  %s690_s20 = sld [smem:[#allocation5 + $0x1]]  ;;  %s664_s0 = sshll.u32 %s1045_s11, 4  ;;  %s665_s0 = int_to_ptr.vmem [resolvable:$true] %s664_s0 }
  0x2e   :  { %785 = vmatprep.subr.mxu0 %v81_v1  ;;  %v75_v8 = vld [vmem:[#allocation6 + $0x40] sm:$0xff]  ;;  %v74_v9 = vld [vmem:[#allocation6 + $0x38] sm:$0xff]  ;;  %v73_v10 = vld [vmem:[#allocation6 + $0x30] sm:$0xff]  ;;  %s691_s2 = sld [smem:[#allocation5 + $0x2]]  ;;  %s1010_s12 = scalar_lea.vmem %s665_s0, 128 }
  0x2f   :  { %786 = vmatpush3.msra.mxu0 %v81_v1  ;;  %v72_v11 = vld [vmem:[#allocation6 + $0x28] sm:$0xff]  ;;  %v71_v12 = vld [vmem:[#allocation6 + $0x20] sm:$0xff]  ;;  %v70_v13 = vld [vmem:[#allocation6 + $0x18] sm:$0xff]  ;;  %s692_s21 = sld [smem:[#allocation5 + $0x3]]  ;;  %p1011_p1 = scmp.ne.s32.totalorder %s665_s0, %s1010_s12 }
  0x30   :  { %787 = vmatprep.subr.mxu0 %v80_v2  ;;  %v69_v14 = vld [vmem:[#allocation6 + $0x10] sm:$0xff]  ;;  %v68_v15 = vld [vmem:[#allocation6 + $0x8] sm:$0xff]  ;;  %v67_v16 = vld [vmem:[#allocation6] sm:$0xff]  ;;  %s693_s6 = sld [smem:[#allocation5 + $0x4]]  ;;  %p1015_p2 = scmp.lt.s32.totalorder %s665_s0, %s665_s0 }
  0x31   :  { %788 = vmatpush3.msra.mxu0 %v80_v2  ;;  %v64_v17 = vld [vmem:[%s1235_s1 + $0x8] sm:$0xff]  ;;  %v65_v18 = vld [vmem:[%s1235_s1 + $0x10] sm:$0xff]  ;;  %v66_v19 = vld [vmem:[%s1235_s1 + $0x18] sm:$0xff]  ;;  %s694_s22 = sld [smem:[#allocation5 + $0x5]]  ;;  %p1016_p3 = scmp.lt.s32.totalorder %s1010_s12, %s1010_s12 }
  0x32   :  { %789 = vmatprep.subr.mxu0 %v79_v3  ;;  %v956_v20 = vld [vmem:[%s1237_s3] sm:$0xff]   ;;  %v263_v27 = vld [vmem:[%s1238_s4 + $0x78] sm:$0xff]  ;;  %v1123_v28 = vld [vmem:[%s1237_s3 + $0x8] sm:$0xff]   ;;  %s696_s23 = sld [smem:[#allocation5 + $0x7]]  ;;  %s532_s24 = scalar_lea.vmem [#allocation2], %s531_s19 }
  0x33   :  { %790 = vmatpush3.msra.mxu0 %v79_v3  ;;  %825 = vmatprep.mubr.msk.bf16.mxu1 %vm192_vm0, %v956_v20  ;;  %v262_v29 = vld [vmem:[%s1238_s4 + $0x70] sm:$0xff]  ;;  %v261_v30 = vld [vmem:[%s1238_s4 + $0x68] sm:$0xff]  ;;  %v260_v31 = vld [vmem:[%s1238_s4 + $0x60] sm:$0xff]  ;;  %s536_s25 = scalar_lea.vmem [#allocation2], %s690_s20  ;;  %p1017_p4 = por %p1016_p3, %p1015_p2 }
  0x34   :  { %791 = vmatprep.subr.mxu0 %v78_v5  ;;  %v259_v32 = vld [vmem:[%s1238_s4 + $0x58] sm:$0xff]  ;;  %v258_v33 = vld [vmem:[%s1238_s4 + $0x50] sm:$0xff]  ;;  %v257_v34 = vld [vmem:[%s1238_s4 + $0x48] sm:$0xff]  ;;  %s540_s26 = scalar_lea.vmem [#allocation2], %s691_s2 }
  0x35   :  { %792 = vmatpush3.msra.mxu0 %v78_v5  ;;  %v256_v35 = vld [vmem:[%s1238_s4 + $0x40] sm:$0xff]  ;;  %v255_v36 = vld [vmem:[%s1238_s4 + $0x38] sm:$0xff]  ;;  %v254_v37 = vld [vmem:[%s1238_s4 + $0x30] sm:$0xff]  ;;  %s544_s27 = scalar_lea.vmem [#allocation2], %s692_s21  ;;  %p1018_p5 = pnand %p1017_p4, %p1011_p1 }
  0x36   :  { %793 = vmatprep.subr.mxu0 %v77_v6  ;;  %v253_v38 = vld [vmem:[%s1238_s4 + $0x28] sm:$0xff]  ;;  %v252_v39 = vld [vmem:[%s1238_s4 + $0x20] sm:$0xff]  ;;  %v251_v40 = vld [vmem:[%s1238_s4 + $0x18] sm:$0xff]  ;;  %s548_s28 = scalar_lea.vmem [#allocation2], %s693_s6 }
  0x37   :  { %794 = vmatpush3.msra.mxu0 %v77_v6  ;;  %v250_v41 = vld [vmem:[%s1238_s4 + $0x10] sm:$0xff]  ;;  %v249_v42 = vld [vmem:[%s1238_s4 + $0x8] sm:$0xff]  ;;  %v248_v43 = vld [vmem:[%s1238_s4] sm:$0xff]  ;;  %s552_s1 = scalar_lea.vmem [#allocation2], %s694_s22 }
  0x38   :  { %795 = vmatprep.subr.mxu0 %v76_v7  ;;  %v686_v50 = vld [vmem:[%s1239_s5] ss:$0 sm:$0xff]  ;;  %v432_v63 = vld [vmem:[%s1238_s4 + $0xf8] sm:$0xff]  ;;  %v431_v0 = vld [vmem:[%s1238_s4 + $0xf0] sm:$0xff]  ;;  %s560_s30 = scalar_lea.vmem [#allocation2], %s696_s23 }
  0x39   :  { %796 = vmatpush3.msra.mxu0 %v76_v7  ;;  %v430_v1 = vld [vmem:[%s1238_s4 + $0xe8] sm:$0xff]  ;;  %v429_v2 = vld [vmem:[%s1238_s4 + $0xe0] sm:$0xff]  ;;  %v428_v3 = vld [vmem:[%s1238_s4 + $0xd8] sm:$0xff] }
  0x3a   :  { %797 = vmatprep.subr.mxu0 %v75_v8  ;;  %v427_v4 = vld [vmem:[%s1238_s4 + $0xd0] sm:$0xff]  ;;  %v426_v5 = vld [vmem:[%s1238_s4 + $0xc8] sm:$0xff]  ;;  %v425_v6 = vld [vmem:[%s1238_s4 + $0xc0] sm:$0xff] }
  0x3b   :  { %798 = vmatpush3.msra.mxu0 %v75_v8  ;;  %v424_v7 = vld [vmem:[%s1238_s4 + $0xb8] sm:$0xff]  ;;  %v423_v8 = vld [vmem:[%s1238_s4 + $0xb0] sm:$0xff] }
  0x3c   :  { %799 = vmatprep.subr.mxu0 %v74_v9 }
  0x3d   :  { %800 = vmatpush3.msra.mxu0 %v74_v9  ;;  %v422_v9 = vld [vmem:[%s1238_s4 + $0xa8] sm:$0xff] }
  0x3e   :  { %801 = vmatprep.subr.mxu0 %v73_v10 }
  0x3f   :  { %802 = vmatpush3.msra.mxu0 %v73_v10  ;;  %v421_v10 = vld [vmem:[%s1238_s4 + $0xa0] sm:$0xff] }
  0x40   :  { %803 = vmatprep.subr.mxu0 %v72_v11 }
  0x41   :  { %804 = vmatpush3.msra.mxu0 %v72_v11  ;;  %v420_v11 = vld [vmem:[%s1238_s4 + $0x98] sm:$0xff] }
  0x42   :  { %805 = vmatprep.subr.mxu0 %v71_v12 }
  0x43   :  { %806 = vmatpush3.msra.mxu0 %v71_v12  ;;  %v419_v12 = vld [vmem:[%s1238_s4 + $0x90] sm:$0xff] }
  0x44   :  { %807 = vmatprep.subr.mxu0 %v70_v13 }
  0x45   :  { %808 = vmatpush3.msra.mxu0 %v70_v13  ;;  %v418_v13 = vld [vmem:[%s1238_s4 + $0x88] sm:$0xff] }
  0x46   :  { %809 = vmatprep.subr.mxu0 %v69_v14 }
  0x47   :  { %810 = vmatpush3.msra.mxu0 %v69_v14  ;;  %v417_v14 = vld [vmem:[%s1238_s4 + $0x80] sm:$0xff] }
  0x48   :  { %811 = vmatprep.subr.mxu0 %v68_v15 }
  0x49   :  { %812 = vmatpush3.msra.mxu0 %v68_v15  ;;  %v579_v15 = vld [vmem:[#allocation9 + $0x78] sm:$0xff] }
  0x4a   :  { %813 = vmatprep.subr.mxu0 %v67_v16 }
  0x4b   :  { %814 = vmatpush3.msra.mxu0 %v67_v16  ;;  %v1043_v16 = vmov 0.0  }
  0x4c   :  { %816 = vmatmul.mubr.f32.vlgmr.msra.gmra.mxu0 %v64_v17  ;;  %v578_v17 = vld [vmem:[#allocation9 + $0x70] sm:$0xff] }
  0x4d   :  { %818 = vmatprep.mubr.f32.mxu0 %v65_v18 }
  0x50   :  { %819 = vmatmul.mubr.f32.gmra.mxu0 %v66_v19 }
  0x51   :  { %871 = vmatprep.mubr.msk.bf16.mxu0 %vm192_vm0, %v956_v20 }
 0x10c   :  { %v817_v21 = vpop.f32.mrf.mxu0 }
 0x10e   :  { %v149_v22 = vpop.f32.mrf.mxu0 }
 0x10f   :  { %v180_v26 = vpack.c.bf16 %v817_v21, %v149_v22  ;;  %v577_v22 = vld [vmem:[#allocation9 + $0x68] sm:$0xff] }
 0x110   :  { %v820_v23 = vpop.f32.mrf.mxu0 }
 0x112   :  { %v159_v24 = vpop.f32.mrf.mxu0 }
 0x113   :  { %v181_v25 = vpack.c.bf16 %v820_v23, %v159_v24  ;;  %v576_v23 = vld [vmem:[#allocation9 + $0x60] sm:$0xff]  ;;  %v575_v24 = vld [vmem:[#allocation9 + $0x58] sm:$0xff] }
 0x115   :  { %821 = vmatprep.subr.bf16.mxu1 %v181_v25 }
 0x116   :  { %822 = vmatpush3.bf16.msra.mxu1 %v181_v25  ;;  %v574_v25 = vld [vmem:[#allocation9 + $0x50] sm:$0xff] }
 0x117   :  { %823 = vmatprep.subr.bf16.mxu1 %v180_v26 }
 0x11a   :  { %824 = vmatpush3.bf16.msra.mxu1 %v180_v26  ;;  %v573_v26 = vld [vmem:[#allocation9 + $0x48] sm:$0xff] }
 0x11b   :  { %829 = vmatprep.subr.mxu1 %v263_v27 }
 0x11d   :  { %826 = vmatmul.mubr.msk.bf16.vlgmr.msra.gmra.mxu1 %vm192_vm0, %v1123_v28 }
 0x11e   :  { %830 = vmatpush3.msra.mxu1 %v263_v27  ;;  %v572_v27 = vld [vmem:[#allocation9 + $0x40] sm:$0xff] }
 0x11f   :  { %831 = vmatprep.subr.mxu1 %v262_v29 }
 0x120   :  { %832 = vmatpush3.msra.mxu1 %v262_v29  ;;  %v570_v29 = vld [vmem:[#allocation9 + $0x30] sm:$0xff] }
 0x121   :  { %833 = vmatprep.subr.mxu1 %v261_v30 }
 0x122   :  { %834 = vmatpush3.msra.mxu1 %v261_v30  ;;  %v569_v30 = vld [vmem:[#allocation9 + $0x28] sm:$0xff] }
 0x123   :  { %835 = vmatprep.subr.mxu1 %v260_v31 }
 0x124   :  { %836 = vmatpush3.msra.mxu1 %v260_v31  ;;  %v568_v31 = vld [vmem:[#allocation9 + $0x20] sm:$0xff] }
 0x125   :  { %837 = vmatprep.subr.mxu1 %v259_v32 }
 0x126   :  { %838 = vmatpush3.msra.mxu1 %v259_v32  ;;  %v567_v32 = vld [vmem:[#allocation9 + $0x18] sm:$0xff] }
 0x127   :  { %839 = vmatprep.subr.mxu1 %v258_v33 }
 0x128   :  { %840 = vmatpush3.msra.mxu1 %v258_v33  ;;  %v566_v33 = vld [vmem:[#allocation9 + $0x10] sm:$0xff] }
 0x129   :  { %841 = vmatprep.subr.mxu1 %v257_v34 }
 0x12a   :  { %842 = vmatpush3.msra.mxu1 %v257_v34  ;;  %v565_v34 = vld [vmem:[#allocation9 + $0x8] sm:$0xff] }
 0x12b   :  { %843 = vmatprep.subr.mxu1 %v256_v35 }
 0x12c   :  { %844 = vmatpush3.msra.mxu1 %v256_v35  ;;  %v564_v35 = vld [vmem:[#allocation9] sm:$0xff] }
 0x12d   :  { %845 = vmatprep.subr.mxu1 %v255_v36 }
 0x12e   :  { %846 = vmatpush3.msra.mxu1 %v255_v36  ;;  %v689_v36 = vld [vmem:[%s1239_s5 + $0x1] ss:$0 sm:$0xff]  ;;  %s695_s5 = sld [smem:[#allocation5 + $0x6]] }
 0x12f   :  { %847 = vmatprep.subr.mxu1 %v254_v37 }
 0x130   :  { %848 = vmatpush3.msra.mxu1 %v254_v37 }
 0x131   :  { %849 = vmatprep.subr.mxu1 %v253_v38 }
 0x132   :  { %850 = vmatpush3.msra.mxu1 %v253_v38 }
 0x133   :  { %851 = vmatprep.subr.mxu1 %v252_v39 }
 0x134   :  { %852 = vmatpush3.msra.mxu1 %v252_v39  ;;  %s556_s29 = scalar_lea.vmem [#allocation2], %s695_s5 }
 0x135   :  { %853 = vmatprep.subr.mxu1 %v251_v40 }
 0x136   :  { %854 = vmatpush3.msra.mxu1 %v251_v40 }
 0x137   :  { %855 = vmatprep.subr.mxu1 %v250_v41 }
 0x138   :  { %856 = vmatpush3.msra.mxu1 %v250_v41 }
 0x139   :  { %857 = vmatprep.subr.mxu1 %v249_v42 }
 0x13a   :  { %858 = vmatpush3.msra.mxu1 %v249_v42 }
 0x13b   :  { %859 = vmatprep.subr.mxu1 %v248_v43 }
 0x13c   :  { %860 = vmatpush3.msra.mxu1 %v248_v43 }
 0x13d   :  { %913 = vmatprep.subr.mxu1 %v1043_v16 }
 0x1dd   :  { %v827_v44 = vpop.f32.mrf.mxu1 }
 0x1df   :  { %v233_v45 = vpop.f32.mrf.mxu1 }
 0x1e0   :  { %861 = vmatprep.mubr.f32.mxu1 %v233_v45 }
 0x1e1   :  { %v828_v46 = vpop.f32.mrf.mxu1 }
 0x1e3   :  { %v236_v47 = vpop.f32.mrf.mxu1 }
 0x1e4   :  { %862 = vmatmul.mubr.f32.vlgmr.msra.gmra.mxu1 %v236_v47 }
 0x1e5   :  { %864 = vmatprep.mubr.f32.mxu1 %v827_v44  ;;  %914 = vmatpush3.msra.mxu1 %v579_v15 }
 0x1e6   :  { %915 = vmatprep.subr.mxu1 %v1043_v16 }
 0x1e7   :  { %916 = vmatpush3.msra.mxu1 %v578_v17 }
 0x1e8   :  { %865 = vmatmul.mubr.f32.gmra.mxu1 %v828_v46  ;;  %917 = vmatprep.subr.mxu1 %v1043_v16 }
 0x1e9   :  { %918 = vmatpush3.msra.mxu1 %v577_v22  ;;  %945 = vmatprep.mubr.msk.f32.mxu1 %vm1044_vm1, %v1043_v16 }
 0x1ea   :  { %919 = vmatprep.subr.mxu1 %v1043_v16 }
 0x1eb   :  { %920 = vmatpush3.msra.mxu1 %v576_v23 }
 0x1ec   :  { %921 = vmatprep.subr.mxu1 %v1043_v16 }
 0x1ed   :  { %922 = vmatpush3.msra.mxu1 %v575_v24 }
 0x1ee   :  { %923 = vmatprep.subr.mxu1 %v1043_v16 }
 0x1ef   :  { %924 = vmatpush3.msra.mxu1 %v574_v25 }
 0x1f0   :  { %925 = vmatprep.subr.mxu1 %v1043_v16 }
 0x1f1   :  { %926 = vmatpush3.msra.mxu1 %v573_v26 }
 0x1f2   :  { %927 = vmatprep.subr.mxu1 %v1043_v16 }
 0x1f3   :  { %928 = vmatpush3.msra.mxu1 %v572_v27 }
 0x1f4   :  { %929 = vmatprep.subr.mxu1 %v1043_v16 }
 0x2a4   :  { %v863_v48 = vpop.f32.mrf.mxu1 }
 0x2a5   :  { %v341_v55 = vadd.f32 %v863_v48, %v686_v50 }
 0x2a6   :  { %v335_v49 = vpop.f32.mrf.mxu1 }
 0x2a7   :  { %v336_v52 = vadd.f32 %v686_v50, %v335_v49  ;;  %v355_v60 = vmax.f32 %v341_v55, 0.0 }
 0x2a8   :  { %v866_v51 = vpop.f32.mrf.mxu1 }
 0x2a9   :  { %v351_v53 = vadd.f32 %v866_v51, %v686_v50  ;;  %v354_v57 = vmax.f32 %v336_v52, 0.0 }
 0x2aa   :  { %v345_v54 = vpop.f32.mrf.mxu1 }
 0x2ab   :  { %v346_v56 = vadd.f32 %v686_v50, %v345_v54  ;;  %v357_v58 = vmax.f32 %v351_v53, 0.0  ;;  %v366_v62 = vpack.c.bf16 %v355_v60, %v354_v57 }
 0x2ad   :  { %v356_v59 = vmax.f32 %v346_v56, 0.0 }
 0x2af   :  { %v367_v61 = vpack.c.bf16 %v357_v58, %v356_v59  ;;  %v697_v58 = vld [vmem:[%s1241_s7] ss:$0 sm:$0xff] }
 0x2b1   :  { %867 = vmatprep.subr.bf16.mxu0 %v367_v61 }
 0x2b2   :  { %868 = vmatpush3.bf16.msra.mxu0 %v367_v61 }
 0x2b3   :  { %869 = vmatprep.subr.bf16.mxu0 %v366_v62 }
 0x2b6   :  { %870 = vmatpush3.bf16.msra.mxu0 %v366_v62 }
 0x2b7   :  { %875 = vmatprep.subr.mxu0 %v432_v63 }
 0x2b9   :  { %872 = vmatmul.mubr.msk.bf16.vlgmr.msra.gmra.mxu0 %vm192_vm0, %v1123_v28  ;;  %v571_v28 = vld [vmem:[#allocation9 + $0x38] sm:$0xff] }
 0x2ba   :  { %876 = vmatpush3.msra.mxu0 %v432_v63  ;;  %930 = vmatpush3.msra.mxu1 %v571_v28 }
 0x2bb   :  { %877 = vmatprep.subr.mxu0 %v431_v0  ;;  %931 = vmatprep.subr.mxu1 %v1043_v16 }
 0x2bc   :  { %878 = vmatpush3.msra.mxu0 %v431_v0  ;;  %932 = vmatpush3.msra.mxu1 %v570_v29 }
 0x2bd   :  { %879 = vmatprep.subr.mxu0 %v430_v1  ;;  %933 = vmatprep.subr.mxu1 %v1043_v16 }
 0x2be   :  { %880 = vmatpush3.msra.mxu0 %v430_v1  ;;  %934 = vmatpush3.msra.mxu1 %v569_v30 }
 0x2bf   :  { %881 = vmatprep.subr.mxu0 %v429_v2  ;;  %935 = vmatprep.subr.mxu1 %v1043_v16 }
 0x2c0   :  { %882 = vmatpush3.msra.mxu0 %v429_v2  ;;  %936 = vmatpush3.msra.mxu1 %v568_v31 }
 0x2c1   :  { %883 = vmatprep.subr.mxu0 %v428_v3  ;;  %937 = vmatprep.subr.mxu1 %v1043_v16 }
 0x2c2   :  { %884 = vmatpush3.msra.mxu0 %v428_v3  ;;  %938 = vmatpush3.msra.mxu1 %v567_v32 }
 0x2c3   :  { %885 = vmatprep.subr.mxu0 %v427_v4  ;;  %939 = vmatprep.subr.mxu1 %v1043_v16 }
 0x2c4   :  { %886 = vmatpush3.msra.mxu0 %v427_v4  ;;  %940 = vmatpush3.msra.mxu1 %v566_v33 }
 0x2c5   :  { %887 = vmatprep.subr.mxu0 %v426_v5  ;;  %941 = vmatprep.subr.mxu1 %v1043_v16 }
 0x2c6   :  { %888 = vmatpush3.msra.mxu0 %v426_v5  ;;  %942 = vmatpush3.msra.mxu1 %v565_v34 }
 0x2c7   :  { %889 = vmatprep.subr.mxu0 %v425_v6  ;;  %943 = vmatprep.subr.mxu1 %v1043_v16 }
 0x2c8   :  { %890 = vmatpush3.msra.mxu0 %v425_v6  ;;  %944 = vmatpush3.msra.mxu1 %v564_v35 }
 0x2c9   :  { %891 = vmatprep.subr.mxu0 %v424_v7 }
 0x2ca   :  { %892 = vmatpush3.msra.mxu0 %v424_v7 }
 0x2cb   :  { %893 = vmatprep.subr.mxu0 %v423_v8 }
 0x2cc   :  { %894 = vmatpush3.msra.mxu0 %v423_v8 }
 0x2cd   :  { %895 = vmatprep.subr.mxu0 %v422_v9 }
 0x2ce   :  { %896 = vmatpush3.msra.mxu0 %v422_v9 }
 0x2cf   :  { %897 = vmatprep.subr.mxu0 %v421_v10 }
 0x2d0   :  { %898 = vmatpush3.msra.mxu0 %v421_v10 }
 0x2d1   :  { %899 = vmatprep.subr.mxu0 %v420_v11 }
 0x2d2   :  { %900 = vmatpush3.msra.mxu0 %v420_v11 }
 0x2d3   :  { %901 = vmatprep.subr.mxu0 %v419_v12 }
 0x2d4   :  { %902 = vmatpush3.msra.mxu0 %v419_v12 }
 0x2d5   :  { %903 = vmatprep.subr.mxu0 %v418_v13 }
 0x2d6   :  { %904 = vmatpush3.msra.mxu0 %v418_v13 }
 0x2d7   :  { %905 = vmatprep.subr.mxu0 %v417_v14 }
 0x2d8   :  { %906 = vmatpush3.msra.mxu0 %v417_v14 }
 0x379   :  { %v873_v18 = vpop.f32.mrf.mxu0 }
 0x37b   :  { %v402_v19 = vpop.f32.mrf.mxu0 }
 0x37c   :  { %907 = vmatprep.mubr.f32.mxu0 %v402_v19 }
 0x37d   :  { %v874_v20 = vpop.f32.mrf.mxu0 }
 0x37f   :  { %v405_v21 = vpop.f32.mrf.mxu0 }
 0x380   :  { %908 = vmatmul.mubr.f32.vlgmr.msra.gmra.mxu0 %v405_v21 }
 0x381   :  { %910 = vmatprep.mubr.f32.mxu0 %v873_v18 }
 0x384   :  { %911 = vmatmul.mubr.f32.gmra.mxu0 %v874_v20 }
 0x440   :  { %v909_v37 = vpop.f32.mrf.mxu0 }
 0x441   :  { %v510_v38 = vadd.f32 %v909_v37, %v689_v36 }
 0x442   :  { %v504_v39 = vpop.f32.mrf.mxu0 }
 0x443   :  { %v524_v40 = vmax.f32 %v510_v38, 0.0  ;;  %v505_v41 = vadd.f32 %v689_v36, %v504_v39 }
 0x444   :  { %v912_v42 = vpop.f32.mrf.mxu0 }
 0x445   :  { %528 = vst [vmem:[#allocation2 + $0x8] sm:$0xff] %v524_v40  ;;  %v523_v43 = vmax.f32 %v505_v41, 0.0  ;;  %v520_v44 = vadd.f32 %v912_v42, %v689_v36 }
 0x446   :  { %v514_v45 = vpop.f32.mrf.mxu0 }
 0x447   :  { %527 = vst [vmem:[#allocation2] sm:$0xff] %v523_v43  ;;  %v526_v46 = vmax.f32 %v520_v44, 0.0  ;;  %v515_v47 = vadd.f32 %v689_v36, %v514_v45 }
 0x449   :  { %530 = vst [vmem:[#allocation2 + $0x18] sm:$0xff] %v526_v46  ;;  %v525_v48 = vmax.f32 %v515_v47, 0.0 }
 0x44b   :  { %529 = vst [vmem:[#allocation2 + $0x10] sm:$0xff] %v525_v48 }
 0x452   :  { %v533_v49 = vld [vmem:[%s532_s24] sm:$0x1] }
 0x453   :  { %v537_v50 = vld [vmem:[%s536_s25] sm:$0x1]  ;;  %534 = vst [vmem:[#allocation3] sm:$0x1] %v533_v49 }
 0x454   :  { %v541_v51 = vld [vmem:[%s540_s26] sm:$0x1]  ;;  %538 = vst [vmem:[#allocation3 + $0x1] sm:$0x1] %v537_v50 }
 0x455   :  { %542 = vst [vmem:[#allocation3 + $0x2] sm:$0x1] %v541_v51  ;;  %v545_v52 = vld [vmem:[%s544_s27] sm:$0x1] }
 0x456   :  { %v549_v53 = vld [vmem:[%s548_s28] sm:$0x1]  ;;  %546 = vst [vmem:[#allocation3 + $0x3] sm:$0x1] %v545_v52 }
 0x457   :  { %v553_v54 = vld [vmem:[%s552_s1] sm:$0x1]  ;;  %550 = vst [vmem:[#allocation3 + $0x4] sm:$0x1] %v549_v53 }
 0x458   :  { %554 = vst [vmem:[#allocation3 + $0x5] sm:$0x1] %v553_v54  ;;  %v557_v55 = vld [vmem:[%s556_s29] sm:$0x1] }
 0x459   :  { %v561_v56 = vld [vmem:[%s560_s30] sm:$0x1]  ;;  %558 = vst [vmem:[#allocation3 + $0x6] sm:$0x1] %v557_v55 }
 0x45a   :  { %562 = vst [vmem:[#allocation3 + $0x7] sm:$0x1] %v561_v56 }
 0x461   :  { %v563_v57 = vld [vmem:[#allocation3] sm:$0xff] }
 0x462   :  { %946 = vmatmul.mubr.f32.vlgmr.msra.gmra.mxu1 %v563_v57 }
 0x522   :  { %v653_v59 = vpop.f32.mrf.mxu1 }
 0x523   :  { %v654_v60 = vadd.f32 %v697_v58, %v653_v59 }
 0x524   :  { %v947_v61 = vpop.f32.mrf.mxu1 }
 0x525   :  { %657 = vst [vmem:[#allocation11] sm:$0xff] %v654_v60 }
 0x526   :  { %1021 = shalt.err (!%p1018_p5)
}
 0x527   :  { %667 = dma.vmem_to_hbm [thread:$0]  %s665_s0, 128, %s1242_s8, [#allocation8]  }
 0x528   :  { %1036 = dma.done.wait [#allocation8], 128  }
 0x529   :  { %1037 = vsyncadd [#allocation8], 4294967168 }
 0x52a   :  { %671 = vsyncpa [#allocation7], 1 }
 0x52b   :  { %672 = vsyncpa [#allocation10], 1 }
 0x52c   :  { %673 = vsyncpa [#allocation8], 1 }

</bundles_post_ra>
